<compile_context>
chip_gen: v7x
topology: tpu7x:2x2x1
jax: 0.10.0
libtpu: 0.0.40
codegen_flags: <defaults>
</compile_context>

<pallas_src>
import jax
import jax.numpy as jnp
from jax.experimental import pallas as pl
from jax.experimental.pallas import tpu as pltpu

HIDDEN = 64


def _round_up(x, m):
    return ((x + m - 1) // m) * m


def _q_mlp_kernel(x_ref,
                  w1_ref, b1_ref,
                  w2_ref, b2_ref,
                  w3_ref, b3_ref,
                  w4_ref, b4_ref,
                  o_ref):
    # fc1 + relu
    h = jnp.dot(x_ref[...], w1_ref[...], preferred_element_type=jnp.float32)
    h = jnp.maximum(h + b1_ref[...], 0.0)
    # fc2 + relu
    h = jnp.dot(h, w2_ref[...], preferred_element_type=jnp.float32)
    h = jnp.maximum(h + b2_ref[...], 0.0)
    # fc3 + relu
    h = jnp.dot(h, w3_ref[...], preferred_element_type=jnp.float32)
    h = jnp.maximum(h + b3_ref[...], 0.0)
    # fc4 (no activation) -- output last dim is the true num_actions (no lane pad)
    q = jnp.dot(h, w4_ref[...], preferred_element_type=jnp.float32)
    o_ref[...] = (q + b4_ref[...]).astype(o_ref.dtype)


def q_forward(x, params, *, batch_tile=2048, min_tiles=1):
    """Fused forward pass of the Q network.

    x:      (B, num_inputs) float32
    params: dict with w1..w4 of shape (in, out) and b1..b4 of shape (1, out)
    batch_tile: max rows per grid step (grid-step overhead dominates, so big).
    min_tiles:  set to 2 on v7x so the parallel batch axis can occupy both
                TensorCores; leave at 1 on v5e/v6e.
    returns (B, num_actions) float32

    Call this inside the caller's jit so the (tiny) tail-row slice fuses away.
    """
    B, num_inputs = x.shape
    num_actions = params["w4"].shape[1]

    # Tile selection: as few grid steps as possible, sublane-aligned tiles,
    # and at most a handful of padded rows.
    n_tiles = max(pl.cdiv(B, batch_tile), min_tiles)
    n_tiles = min(n_tiles, max(1, B // 8))          # never go below 8-row tiles
    tb = _round_up(pl.cdiv(B, n_tiles), 8)
    n_tiles = pl.cdiv(B, tb)
    bp = n_tiles * tb
    x_p = x if bp == B else jnp.pad(x, ((0, bp - B), (0, 0)))

    # Weights/biases: full-array block, same block every grid step -> stay
    # VMEM-resident across the batch loop (their DMA is amortized).
    def resident(arr):
        return pl.BlockSpec(arr.shape, lambda i: (0, 0))

    in_specs = [
        pl.BlockSpec((tb, num_inputs), lambda i: (i, 0)),   # activations: tiled over batch
        resident(params["w1"]), resident(params["b1"]),
        resident(params["w2"]), resident(params["b2"]),
        resident(params["w3"]), resident(params["b3"]),
        resident(params["w4"]), resident(params["b4"]),
    ]
    # Last block dim == full array dim (num_actions), so no (8,128) issue and
    # no 16x writeback inflation.  Masked stores are free here (compute idle).
    out_spec = pl.BlockSpec((tb, num_actions), lambda i: (i, 0))

    out = pl.pallas_call(
        _q_mlp_kernel,
        out_shape=jax.ShapeDtypeStruct((bp, num_actions), jnp.float32),
        grid=(n_tiles,),
        in_specs=in_specs,
        out_specs=out_spec,
        compiler_params=pltpu.CompilerParams(
            # Batch tiles are independent.  If profiling on v7x shows both TCs
            # are not used, switch to pltpu.CORE_PARALLEL here.
            dimension_semantics=("parallel",),
        ),
    )(x_p,
      params["w1"], params["b1"],
      params["w2"], params["b2"],
      params["w3"], params["b3"],
      params["w4"], params["b4"])

    return out if bp == B else out[:B]


def init_params(key, num_inputs, num_actions):
    """Deterministic init mirroring nn.Linear's U(-1/sqrt(fan_in), 1/sqrt(fan_in))."""
    dims = [(num_inputs, HIDDEN), (HIDDEN, HIDDEN), (HIDDEN, HIDDEN), (HIDDEN, num_actions)]
    params = {}
    for i, (fan_in, fan_out) in enumerate(dims, start=1):
        key, kw, kb = jax.random.split(key, 3)
        bound = 1.0 / jnp.sqrt(jnp.float32(fan_in))
        params[f"w{i}"] = jax.random.uniform(
            kw, (fan_in, fan_out), jnp.float32, minval=-bound, maxval=bound)
        params[f"b{i}"] = jax.random.uniform(
            kb, (1, fan_out), jnp.float32, minval=-bound, maxval=bound)
    return params


def q_forward_ref(x, params):
    """Pure-JAX reference for correctness checking."""
    h = jnp.maximum(x @ params["w1"] + params["b1"], 0.0)
    h = jnp.maximum(h @ params["w2"] + params["b2"], 0.0)
    h = jnp.maximum(h @ params["w3"] + params["b3"], 0.0)
    return h @ params["w4"] + params["b4"]


if __name__ == "__main__":
    key = jax.random.PRNGKey(0)
    num_inputs, num_actions = 32, 8

    kp, kx1, kx2, kx3 = jax.random.split(key, 4)
    params = init_params(kp, num_inputs, num_actions)

    fwd = jax.jit(q_forward, static_argnames=("batch_tile", "min_tiles"))

    # Acting-style tiny batch: single grid step, no padding anywhere.
    x_small = jax.random.normal(kx1, (8, num_inputs), jnp.float32)
    out_small = fwd(x_small, params)
    jax.block_until_ready(out_small)
    assert out_small.shape == (8, num_actions)
    assert jnp.allclose(out_small, q_forward_ref(x_small, params), atol=1e-5, rtol=1e-5)

    # Ragged replay-style batch that is not a tile multiple: 3 tiles of 88 rows
    # (only 4 pad rows), exercising weight residency across grid steps.
    x_big = jax.random.normal(kx2, (260, num_inputs), jnp.float32)
    out_big = fwd(x_big, params, batch_tile=128)
    jax.block_until_ready(out_big)
    assert out_big.shape == (260, num_actions)
    assert jnp.allclose(out_big, q_forward_ref(x_big, params), atol=1e-5, rtol=1e-5)

    # v7x-style split into 2 parallel tiles (harmless on v5e/v6e).
    x_mid = jax.random.normal(kx3, (512, num_inputs), jnp.float32)
    out_mid = fwd(x_mid, params, min_tiles=2)
    jax.block_until_ready(out_mid)
    assert out_mid.shape == (512, num_actions)
    assert jnp.allclose(out_mid, q_forward_ref(x_mid, params), atol=1e-5, rtol=1e-5)

    print("KERNEL_OK")
</pallas_src>

<mosaic_0001>
module attributes {stable_mosaic.version = 11 : i64} {
  func.func @_q_mlp_kernel(%arg0: i32, %arg1: memref<8x32xf32, #tpu.memory_space<vmem>>, %arg2: memref<32x64xf32, #tpu.memory_space<vmem>>, %arg3: memref<1x64xf32, #tpu.memory_space<vmem>>, %arg4: memref<64x64xf32, #tpu.memory_space<vmem>>, %arg5: memref<1x64xf32, #tpu.memory_space<vmem>>, %arg6: memref<64x64xf32, #tpu.memory_space<vmem>>, %arg7: memref<1x64xf32, #tpu.memory_space<vmem>>, %arg8: memref<64x8xf32, #tpu.memory_space<vmem>>, %arg9: memref<1x8xf32, #tpu.memory_space<vmem>>, %arg10: memref<8x8xf32, #tpu.memory_space<vmem>>) attributes {dimension_semantics = [#tpu.dimension_semantics<parallel>], iteration_bounds = array<i64: 1>, scalar_prefetch = 0 : i64, scratch_operands = 0 : i64, tpu.core_type = #tpu.core_type<tc>, window_params = [{transform_indices = @transform_0, window_bounds = array<i64: 8, 32>}, {pipeline_mode = #tpu.pipeline_mode<synchronous>, transform_indices = @transform_1, window_bounds = array<i64: 32, 64>}, {pipeline_mode = #tpu.pipeline_mode<synchronous>, transform_indices = @transform_2, window_bounds = array<i64: 1, 64>}, {pipeline_mode = #tpu.pipeline_mode<synchronous>, transform_indices = @transform_3, window_bounds = array<i64: 64, 64>}, {pipeline_mode = #tpu.pipeline_mode<synchronous>, transform_indices = @transform_4, window_bounds = array<i64: 1, 64>}, {pipeline_mode = #tpu.pipeline_mode<synchronous>, transform_indices = @transform_5, window_bounds = array<i64: 64, 64>}, {pipeline_mode = #tpu.pipeline_mode<synchronous>, transform_indices = @transform_6, window_bounds = array<i64: 1, 64>}, {pipeline_mode = #tpu.pipeline_mode<synchronous>, transform_indices = @transform_7, window_bounds = array<i64: 64, 8>}, {pipeline_mode = #tpu.pipeline_mode<synchronous>, transform_indices = @transform_8, window_bounds = array<i64: 1, 8>}, {transform_indices = @transform_9, window_bounds = array<i64: 8, 8>}]} {
    %c0 = arith.constant 0 : index
    %c0_0 = arith.constant 0 : index
    %0 = vector.load %arg1[%c0, %c0_0] : memref<8x32xf32, #tpu.memory_space<vmem>>, vector<8x32xf32>
    %c0_1 = arith.constant 0 : index
    %c0_2 = arith.constant 0 : index
    %1 = vector.load %arg2[%c0_1, %c0_2] : memref<32x64xf32, #tpu.memory_space<vmem>>, vector<32x64xf32>
    %cst = arith.constant dense<0.000000e+00> : vector<8x64xf32>
    %2 = tpu.matmul %0, %1, %cst {dimension_numbers = #tpu.dot_dimension_numbers<[1], [0], [0], [1], [0, 0, 1, 1], [], []>} : vector<8x32xf32>, vector<32x64xf32>, vector<8x64xf32> -> vector<8x64xf32>
    %c0_3 = arith.constant 0 : index
    %c0_4 = arith.constant 0 : index
    %3 = vector.load %arg3[%c0_3, %c0_4] : memref<1x64xf32, #tpu.memory_space<vmem>>, vector<1x64xf32>
    %4 = vector.broadcast %3 : vector<1x64xf32> to vector<8x64xf32>
    %5 = arith.addf %2, %4 : vector<8x64xf32>
    %cst_5 = arith.constant 0.000000e+00 : f32
    %6 = vector.broadcast %cst_5 : f32 to vector<8x64xf32>
    %7 = arith.maximumf %5, %6 : vector<8x64xf32>
    %c0_6 = arith.constant 0 : index
    %c0_7 = arith.constant 0 : index
    %8 = vector.load %arg4[%c0_6, %c0_7] : memref<64x64xf32, #tpu.memory_space<vmem>>, vector<64x64xf32>
    %cst_8 = arith.constant dense<0.000000e+00> : vector<8x64xf32>
    %9 = tpu.matmul %7, %8, %cst_8 {dimension_numbers = #tpu.dot_dimension_numbers<[1], [0], [0], [1], [0, 0, 1, 1], [], []>} : vector<8x64xf32>, vector<64x64xf32>, vector<8x64xf32> -> vector<8x64xf32>
    %c0_9 = arith.constant 0 : index
    %c0_10 = arith.constant 0 : index
    %10 = vector.load %arg5[%c0_9, %c0_10] : memref<1x64xf32, #tpu.memory_space<vmem>>, vector<1x64xf32>
    %11 = vector.broadcast %10 : vector<1x64xf32> to vector<8x64xf32>
    %12 = arith.addf %9, %11 : vector<8x64xf32>
    %cst_11 = arith.constant 0.000000e+00 : f32
    %13 = vector.broadcast %cst_11 : f32 to vector<8x64xf32>
    %14 = arith.maximumf %12, %13 : vector<8x64xf32>
    %c0_12 = arith.constant 0 : index
    %c0_13 = arith.constant 0 : index
    %15 = vector.load %arg6[%c0_12, %c0_13] : memref<64x64xf32, #tpu.memory_space<vmem>>, vector<64x64xf32>
    %cst_14 = arith.constant dense<0.000000e+00> : vector<8x64xf32>
    %16 = tpu.matmul %14, %15, %cst_14 {dimension_numbers = #tpu.dot_dimension_numbers<[1], [0], [0], [1], [0, 0, 1, 1], [], []>} : vector<8x64xf32>, vector<64x64xf32>, vector<8x64xf32> -> vector<8x64xf32>
    %c0_15 = arith.constant 0 : index
    %c0_16 = arith.constant 0 : index
    %17 = vector.load %arg7[%c0_15, %c0_16] : memref<1x64xf32, #tpu.memory_space<vmem>>, vector<1x64xf32>
    %18 = vector.broadcast %17 : vector<1x64xf32> to vector<8x64xf32>
    %19 = arith.addf %16, %18 : vector<8x64xf32>
    %cst_17 = arith.constant 0.000000e+00 : f32
    %20 = vector.broadcast %cst_17 : f32 to vector<8x64xf32>
    %21 = arith.maximumf %19, %20 : vector<8x64xf32>
    %c0_18 = arith.constant 0 : index
    %c0_19 = arith.constant 0 : index
    %22 = vector.load %arg8[%c0_18, %c0_19] : memref<64x8xf32, #tpu.memory_space<vmem>>, vector<64x8xf32>
    %cst_20 = arith.constant dense<0.000000e+00> : vector<8x8xf32>
    %23 = tpu.matmul %21, %22, %cst_20 {dimension_numbers = #tpu.dot_dimension_numbers<[1], [0], [0], [1], [0, 0, 1, 1], [], []>} : vector<8x64xf32>, vector<64x8xf32>, vector<8x8xf32> -> vector<8x8xf32>
    %c0_21 = arith.constant 0 : index
    %c0_22 = arith.constant 0 : index
    %24 = vector.load %arg9[%c0_21, %c0_22] : memref<1x8xf32, #tpu.memory_space<vmem>>, vector<1x8xf32>
    %25 = vector.broadcast %24 : vector<1x8xf32> to vector<8x8xf32>
    %26 = arith.addf %23, %25 : vector<8x8xf32>
    %c0_23 = arith.constant 0 : index
    %c0_24 = arith.constant 0 : index
    %27 = vector.load %arg10[%c0_23, %c0_24] : memref<8x8xf32, #tpu.memory_space<vmem>>, vector<8x8xf32>
    tpu.vector_store %arg10[%c0_23, %c0_24], %26 {strides = array<i32>} : memref<8x8xf32, #tpu.memory_space<vmem>>, vector<8x8xf32>,
    return
  }
  func.func @transform_0(%arg0: i32) -> (i32, i32) {
    %c0_i32 = arith.constant 0 : i32
    %c0_i32_0 = arith.constant 0 : i32
    return %arg0, %c0_i32 : i32, i32
  }
  func.func @transform_1(%arg0: i32) -> (i32, i32) {
    %c0_i32 = arith.constant 0 : i32
    %c0_i32_0 = arith.constant 0 : i32
    %c0_i32_1 = arith.constant 0 : i32
    return %c0_i32, %c0_i32_0 : i32, i32
  }
  func.func @transform_2(%arg0: i32) -> (i32, i32) {
    %c0_i32 = arith.constant 0 : i32
    %c0_i32_0 = arith.constant 0 : i32
    %c0_i32_1 = arith.constant 0 : i32
    return %c0_i32, %c0_i32_0 : i32, i32
  }
  func.func @transform_3(%arg0: i32) -> (i32, i32) {
    %c0_i32 = arith.constant 0 : i32
    %c0_i32_0 = arith.constant 0 : i32
    %c0_i32_1 = arith.constant 0 : i32
    return %c0_i32, %c0_i32_0 : i32, i32
  }
  func.func @transform_4(%arg0: i32) -> (i32, i32) {
    %c0_i32 = arith.constant 0 : i32
    %c0_i32_0 = arith.constant 0 : i32
    %c0_i32_1 = arith.constant 0 : i32
    return %c0_i32, %c0_i32_0 : i32, i32
  }
  func.func @transform_5(%arg0: i32) -> (i32, i32) {
    %c0_i32 = arith.constant 0 : i32
    %c0_i32_0 = arith.constant 0 : i32
    %c0_i32_1 = arith.constant 0 : i32
    return %c0_i32, %c0_i32_0 : i32, i32
  }
  func.func @transform_6(%arg0: i32) -> (i32, i32) {
    %c0_i32 = arith.constant 0 : i32
    %c0_i32_0 = arith.constant 0 : i32
    %c0_i32_1 = arith.constant 0 : i32
    return %c0_i32, %c0_i32_0 : i32, i32
  }
  func.func @transform_7(%arg0: i32) -> (i32, i32) {
    %c0_i32 = arith.constant 0 : i32
    %c0_i32_0 = arith.constant 0 : i32
    %c0_i32_1 = arith.constant 0 : i32
    return %c0_i32, %c0_i32_0 : i32, i32
  }
  func.func @transform_8(%arg0: i32) -> (i32, i32) {
    %c0_i32 = arith.constant 0 : i32
    %c0_i32_0 = arith.constant 0 : i32
    %c0_i32_1 = arith.constant 0 : i32
    return %c0_i32, %c0_i32_0 : i32, i32
  }
  func.func @transform_9(%arg0: i32) -> (i32, i32) {
    %c0_i32 = arith.constant 0 : i32
    %c0_i32_0 = arith.constant 0 : i32
    return %arg0, %c0_i32 : i32, i32
  }
}

</mosaic_0001>

<bundles_post_ra>
// kernel: q_forward.1
= control target key start
LH: loop header
LB: loop body
LE: loop exit
PB: predicated region body
PF: predicated region fallthrough
CT: control target
= control target key end

     0   :  { %14 = vsyncpa [#allocation3], 0  ;;  %s841_s0 = inlined_call_operand.vmem [shape: f32[8,32], index: 0, kind: input, shape index: {}]   ;;  %s842_s1 = inlined_call_operand.hbm [shape: f32[32,64], index: 1, kind: input, shape index: {}]   ;;  %s843_s2 = inlined_call_operand.vmem [shape: f32[1,64], index: 2, kind: input, shape index: {}]   ;;  %s844_s3 = inlined_call_operand.vmem [shape: f32[64,64], index: 3, kind: input, shape index: {}]   ;;  %s845_s4 = inlined_call_operand.vmem [shape: f32[1,64], index: 4, kind: input, shape index: {}]   ;;  %s846_s5 = inlined_call_operand.hbm [shape: f32[64,64], index: 5, kind: input, shape index: {}]   ;;  %s847_s6 = inlined_call_operand.vmem [shape: f32[1,64], index: 6, kind: input, shape index: {}]   ;;  %s848_s7 = inlined_call_operand.vmem [shape: f32[64,8], index: 7, kind: input, shape index: {}]   ;;  %s849_s8 = inlined_call_operand.vmem [shape: f32[1,8], index: 8, kind: input, shape index: {}]   ;;  %s850_s9 = inlined_call_operand.hbm [shape: f32[8,8], index: 9, kind: output, shape index: {}]  }
   0x1   :  { %15 = vsyncpa [#allocation6], 0 }
   0x2   :  { %16 = vsyncpa [#allocation4], 0  ;;  %s663_s30 = smov [#allocation2]   ;;  %s591_s13 = scalar_lea.hbm %s842_s1, 512 }
   0x3   :  { %s24_s10 = sshll.u32 %s663_s30, 4  ;;  %p592_p0 = scmp.ne.s32.totalorder %s842_s1, %s591_s13  ;;  %s25_s10 = int_to_ptr.vmem [resolvable:$true] %s24_s10 }
   0x4   :  { %p595_p1 = scmp.lt.u32.totalorder %s591_s13, %s842_s1 }
   0x6   :  { %p597_p2 = pnand %p595_p1, %p592_p0 }
   0x8   :  { %600 = shalt.err (!%p597_p2)
}
   0x9   :  { %s601_s18 = scalar_lea.vmem %s25_s10, 512  ;;  %p606_p4 = scmp.lt.s32.totalorder %s25_s10, %s25_s10 }
   0xa   :  { %p602_p3 = scmp.ne.s32.totalorder %s25_s10, %s601_s18  ;;  %p607_p5 = scmp.lt.s32.totalorder %s601_s18, %s601_s18 }
   0xc   :  { %p608_p6 = por %p607_p5, %p606_p4 }
   0xe   :  { %p609_p7 = pnand %p608_p6, %p602_p3 }
  0x10   :  { %612 = shalt.err (!%p609_p7)
}
  0x11   :  { %s664_s19 = smov 128   ;;  %s665_s20 = smov 8  }
  0x12   :  { %30 = dma.hbm_to_vmem [thread:$0]  %s842_s1, 512, %s25_s10, [#allocation3], %s664_s19, %s664_s19, %s665_s20  }
  0x13   :  { %s666_s23 = smov [#allocation5]   ;;  %s613_s27 = scalar_lea.hbm %s846_s5, 1024 }
  0x14   :  { %s42_s24 = sshll.u32 %s666_s23, 4  ;;  %p614_p8 = scmp.ne.s32.totalorder %s846_s5, %s613_s27  ;;  %s43_s24 = int_to_ptr.vmem [resolvable:$true] %s42_s24 }
  0x15   :  { %p617_p9 = scmp.lt.u32.totalorder %s613_s27, %s846_s5 }
  0x17   :  { %p619_p10 = pnand %p617_p9, %p614_p8 }
  0x19   :  { %622 = shalt.err (!%p619_p10)
}
  0x1a   :  { %s623_s12 = scalar_lea.vmem %s43_s24, 1024  ;;  %p628_p12 = scmp.lt.s32.totalorder %s43_s24, %s43_s24 }
  0x1b   :  { %p624_p11 = scmp.ne.s32.totalorder %s43_s24, %s623_s12  ;;  %p629_p13 = scmp.lt.s32.totalorder %s623_s12, %s623_s12 }
  0x1d   :  { %p630_p0 = por %p629_p13, %p628_p12 }
  0x1f   :  { %p631_p1 = pnand %p630_p0, %p624_p11 }
  0x21   :  { %634 = shalt.err (!%p631_p1)
}
  0x22   :  { %48 = dma.hbm_to_vmem [thread:$0]  %s846_s5, 1024, %s43_s24, [#allocation6], %s664_s19, %s664_s19, %s665_s20  }
  0x23   :  { %657 = dma.done.wait [#allocation3], 512  }
  0x24   :  { %658 = vsyncadd [#allocation3], 4294966784 }
  0x25   :  { %659 = dma.done.wait [#allocation6], 1024  }
  0x26   :  { %660 = vsyncadd [#allocation6], 4294966272  ;;  %v667_v0 = vmov 0.0|0.0   ;;  %vm668_vm0 = vmmov 0   ;;  %v669_v1 = vmov 0.0   ;;  %v62_v2 = vld [vmem:[#allocation2] sm:$0xff] }
  0x27   :  { %541 = vmatprep.subr.bf16.mxu0 %v667_v0  ;;  %481 = vmatprep.mubr.msk.f32.mxu0 %vm668_vm0, %v669_v1  ;;  %v63_v3 = vld [vmem:[#allocation2 + $0x8] sm:$0xff]  ;;  %v64_v4 = vld [vmem:[#allocation2 + $0x10] sm:$0xff]  ;;  %v65_v6 = vld [vmem:[#allocation2 + $0x18] sm:$0xff]  ;;  %vm73_vm1 = vcmask 261120   ;;  %vm163_vm2 = vcmask 523264   ;;  %s670_s27 = smov [#allocation7]  }
  0x28   :  { %547 = vmatprep.subr.bf16.mxu1 %v667_v0  ;;  %500 = vmatprep.mubr.msk.f32.mxu1 %vm668_vm0, %v669_v1  ;;  %v542_v5 = vpack.c.bf16 %v63_v3, %v62_v2  ;;  %v148_v7 = vld [vmem:[%s844_s3] sm:$0xff]  ;;  %v149_v8 = vld [vmem:[%s844_s3 + $0x8] sm:$0xff]  ;;  %v150_v9 = vld [vmem:[%s844_s3 + $0x10] sm:$0xff]  ;;  %v545_v11 = vpack.c.bf16 %v65_v6, %v64_v4  ;;  %s423_s28 = sshll.u32 %s670_s27, 4  ;;  %vm415_vm3 = vcmask 64512   ;;  %s424_s28 = int_to_ptr.vmem [resolvable:$true] %s423_s28 }
  0x29   :  { %v151_v10 = vld [vmem:[%s844_s3 + $0x18] sm:$0xff]  ;;  %v548_v12 = vpack.c.bf16 %v149_v8, %v148_v7  ;;  %v152_v14 = vld [vmem:[%s844_s3 + $0x20] sm:$0xff]  ;;  %v153_v15 = vld [vmem:[%s844_s3 + $0x28] sm:$0xff]  ;;  %p640_p3 = scmp.lt.s32.totalorder %s424_s28, %s424_s28 }
  0x2a   :  { %543 = vmatpush3.bf16.msra.mxu0 %v542_v5  ;;  %v551_v13 = vpack.c.bf16 %v151_v10, %v150_v9  ;;  %v61_v16 = vld [vmem:[%s841_s0] sm:$0xff]  ;;  %v554_v17 = vpack.c.bf16 %v153_v15, %v152_v14  ;;  %v154_v18 = vld [vmem:[%s844_s3 + $0x30] sm:$0xff]  ;;  %v155_v19 = vld [vmem:[%s844_s3 + $0x38] sm:$0xff] }
  0x2b   :  { %544 = vmatprep.subr.bf16.mxu0 %v667_v0  ;;  %549 = vmatpush3.bf16.msra.mxu1 %v548_v12  ;;  %v557_v20 = vpack.c.bf16 %v155_v19, %v154_v18  ;;  %v238_v21 = vld [vmem:[#allocation5] sm:$0xff]  ;;  %v239_v22 = vld [vmem:[#allocation5 + $0x8] sm:$0xff]  ;;  %v240_v23 = vld [vmem:[#allocation5 + $0x10] sm:$0xff] }
  0x2c   :  { %550 = vmatprep.subr.bf16.mxu1 %v667_v0  ;;  %v560_v24 = vpack.c.bf16 %v239_v22, %v238_v21  ;;  %v241_v25 = vld [vmem:[#allocation5 + $0x18] sm:$0xff]  ;;  %v242_v27 = vld [vmem:[#allocation5 + $0x20] sm:$0xff]  ;;  %v243_v28 = vld [vmem:[#allocation5 + $0x28] sm:$0xff] }
  0x2d   :  { %v563_v26 = vpack.c.bf16 %v241_v25, %v240_v23  ;;  %v566_v29 = vpack.c.bf16 %v243_v28, %v242_v27  ;;  %v433_v30 = vld [vmem:[%s843_s2] ss:$0 sm:$0xff]  ;;  %v244_v35 = vld [vmem:[#allocation5 + $0x30] sm:$0xff]  ;;  %v245_v36 = vld [vmem:[#allocation5 + $0x38] sm:$0xff] }
  0x2e   :  { %546 = vmatpush3.bf16.msra.mxu0 %v545_v11  ;;  %v569_v37 = vpack.c.bf16 %v245_v36, %v244_v35  ;;  %v327_v38 = vld [vmem:[%s848_s7] sm:$0xff]  ;;  %v328_v39 = vld [vmem:[%s848_s7 + $0x8] sm:$0xff]  ;;  %v329_v40 = vld [vmem:[%s848_s7 + $0x10] sm:$0xff] }
  0x2f   :  { %559 = vmatprep.subr.bf16.mxu0 %v667_v0  ;;  %552 = vmatpush3.bf16.msra.mxu1 %v551_v13  ;;  %v572_v41 = vpack.c.bf16 %v328_v39, %v327_v38  ;;  %v330_v42 = vld [vmem:[%s848_s7 + $0x18] sm:$0xff]  ;;  %v331_v44 = vld [vmem:[%s848_s7 + $0x20] sm:$0xff]  ;;  %v332_v45 = vld [vmem:[%s848_s7 + $0x28] sm:$0xff] }
  0x30   :  { %553 = vmatprep.subr.bf16.mxu1 %v667_v0  ;;  %v575_v43 = vpack.c.bf16 %v330_v42, %v329_v40  ;;  %v578_v46 = vpack.c.bf16 %v332_v45, %v331_v44  ;;  %v435_v47 = vld [vmem:[%s845_s4] ss:$0 sm:$0xff]  ;;  %v333_v52 = vld [vmem:[%s848_s7 + $0x30] sm:$0xff]  ;;  %v334_v53 = vld [vmem:[%s848_s7 + $0x38] sm:$0xff]  ;;  %s635_s7 = scalar_lea.vmem %s424_s28, 128 }
  0x31   :  { %482 = vmatmul.mubr.msk.f32.vlgmr.msra.gmra.mrb[0].mxu0 %vm73_vm1, %v61_v16  ;;  %v581_v54 = vpack.c.bf16 %v334_v53, %v333_v52  ;;  %v437_v55 = vld [vmem:[%s847_s6] ss:$0 sm:$0xff]  ;;  %p636_p2 = scmp.ne.s32.totalorder %s424_s28, %s635_s7  ;;  %p641_p4 = scmp.lt.s32.totalorder %s635_s7, %s635_s7 }
  0x32   :  { %519 = vmatprep.mubr.msk.f32.mxu0 %vm668_vm0, %v669_v1  ;;  %561 = vmatpush3.bf16.msra.mxu0 %v560_v24  ;;  %v439_v60 = vld [vmem:[%s849_s8] ss:$0 sm:$0xff] }
  0x33   :  { %555 = vmatpush3.bf16.msra.mxu1 %v554_v17  ;;  %562 = vmatprep.subr.bf16.mxu0 %v667_v0  ;;  %p642_p5 = por %p641_p4, %p640_p3 }
  0x34   :  { %556 = vmatprep.subr.bf16.mxu1 %v667_v0 }
  0x35   :  { %p643_p6 = pnand %p642_p5, %p636_p2 }
  0x36   :  { %564 = vmatpush3.bf16.msra.mxu0 %v563_v26 }
  0x37   :  { %558 = vmatpush3.bf16.msra.mxu1 %v557_v20  ;;  %565 = vmatprep.subr.bf16.mxu0 %v667_v0 }
  0x38   :  { %571 = vmatprep.subr.bf16.mxu1 %v667_v0 }
  0x3a   :  { %567 = vmatpush3.bf16.msra.mxu0 %v566_v29 }
  0x3b   :  { %568 = vmatprep.subr.bf16.mxu0 %v667_v0 }
  0x3e   :  { %570 = vmatpush3.bf16.msra.mxu0 %v569_v37 }
 0x104   :  { %v143_v31 = vpop.f32.mrb[0].mxu0 }
 0x105   :  { %v144_v32 = vadd.f32 %v433_v30, %v143_v31  ;;  %v483_v33 = vpop.f32.mrb[1].mxu0 }
 0x107   :  { %v147_v34 = vmax.f32 %v144_v32, 0.0 }
 0x109   :  { %501 = vmatmul.mubr.msk.f32.vlgmr.msra.gmra.mrb[0].mxu1 %vm163_vm2, %v147_v34 }
 0x10a   :  { %538 = vmatprep.mubr.msk.f32.mxu1 %vm668_vm0, %v669_v1  ;;  %573 = vmatpush3.bf16.msra.mxu1 %v572_v41 }
 0x10b   :  { %574 = vmatprep.subr.bf16.mxu1 %v667_v0 }
 0x10e   :  { %576 = vmatpush3.bf16.msra.mxu1 %v575_v43 }
 0x10f   :  { %577 = vmatprep.subr.bf16.mxu1 %v667_v0 }
 0x112   :  { %579 = vmatpush3.bf16.msra.mxu1 %v578_v46 }
 0x113   :  { %580 = vmatprep.subr.bf16.mxu1 %v667_v0 }
 0x116   :  { %582 = vmatpush3.bf16.msra.mxu1 %v581_v54 }
 0x1dc   :  { %v233_v48 = vpop.f32.mrb[0].mxu1 }
 0x1dd   :  { %v234_v49 = vadd.f32 %v435_v47, %v233_v48  ;;  %v502_v50 = vpop.f32.mrb[1].mxu1 }
 0x1df   :  { %v237_v51 = vmax.f32 %v234_v49, 0.0 }
 0x1e1   :  { %520 = vmatmul.mubr.msk.f32.vlgmr.msra.gmra.mrb[2].mxu0 %vm163_vm2, %v237_v51 }
 0x2b4   :  { %v322_v56 = vpop.f32.mrb[2].mxu0 }
 0x2b5   :  { %v323_v57 = vadd.f32 %v437_v55, %v322_v56  ;;  %v521_v58 = vpop.f32.mrb[3].mxu0 }
 0x2b7   :  { %v326_v59 = vmax.f32 %v323_v57, 0.0 }
 0x2b9   :  { %539 = vmatmul.mubr.msk.f32.vlgmr.msra.gmra.mrb[2].mxu1 %vm163_vm2, %v326_v59 }
 0x38c   :  { %v411_v61 = vpop.f32.mrb[2].mxu1 }
 0x38d   :  { %v412_v62 = vadd.f32 %v439_v60, %v411_v61  ;;  %v540_v63 = vpop.f32.mrb[3].mxu1 }
 0x38f   :  { %416 = vst.msk [vmem:[#allocation7] sm:$0xff] %vm415_vm3, %v412_v62 }
 0x390   :  { %646 = shalt.err (!%p643_p6)
}
 0x391   :  { %s647_s0 = scalar_lea.hbm %s850_s9, 128 }
 0x392   :  { %p648_p7 = scmp.ne.s32.totalorder %s850_s9, %s647_s0  ;;  %p651_p8 = scmp.lt.u32.totalorder %s647_s0, %s850_s9 }
 0x394   :  { %p653_p9 = pnand %p651_p8, %p648_p7 }
 0x396   :  { %656 = shalt.err (!%p653_p9)
}
 0x397   :  { %426 = dma.vmem_to_hbm [thread:$0]  %s424_s28, 128, %s850_s9, [#allocation4]  }
 0x398   :  { %661 = dma.done.wait [#allocation4], 128  }
 0x399   :  { %662 = vsyncadd [#allocation4], 4294967168 }
 0x39a   :  { %430 = vsyncpa [#allocation3], 1 }
 0x39b   :  { %431 = vsyncpa [#allocation6], 1 }
 0x39c   :  { %432 = vsyncpa [#allocation4], 1 }

</bundles_post_ra>
